<compile_context>
chip_gen: v7x
topology: tpu7x:2x2x1
jax: 0.10.0
libtpu: 0.0.40
codegen_flags: <defaults>
</compile_context>

<pallas_src>
import jax
import jax.numpy as jnp
from jax.experimental import pallas as pl
from jax.experimental.pallas import tpu as pltpu


def _copy_kernel(x_ref, o_ref):
    # Straight VMEM->VMEM copy of the current tile.
    o_ref[...] = x_ref[...]


_LANE_CANDIDATES = (8192, 4096, 2048, 1024, 512, 256, 128)
_SUBLANE = {4: 8, 2: 16, 1: 32}          # packed-sublane multiple per itemsize
_TARGET_BLOCK_BYTES = 2 * 1024 * 1024    # ~2 MiB/block


def _choose_layout(n_elems, itemsize):
    """Pick a lane width (multiple of 128) such that rows is a sublane multiple."""
    sub = _SUBLANE.get(itemsize, 8)
    for lane in _LANE_CANDIDATES:
        if n_elems % (lane * sub) == 0:
            return lane, sub
    return None, sub


def _choose_tile_rows(rows, lane, itemsize, sub):
    """Largest sublane-multiple divisor of `rows` within the byte budget."""
    target = max(sub, (_TARGET_BLOCK_BYTES // (lane * itemsize)) // sub * sub)
    if rows >= 2 * sub:
        # Prefer >= 2 grid steps so both v7x TensorCores get work on this
        # bandwidth-bound copy.
        target = min(target, max(sub, (rows // 2) // sub * sub))
    target = min(target, rows)
    d = target
    while d >= sub:
        if rows % d == 0:
            return d
        d -= sub
    return sub  # rows is a multiple of sub, so sub always divides rows


def _case3_forward_impl(x: jax.Array) -> jax.Array:
    """Pallas implementation of Case3ModelInterface.forward (identity)."""
    if x.ndim == 0 or x.size == 0:
        return x

    n = x.size
    itemsize = jnp.dtype(x.dtype).itemsize
    lane, sub = _choose_layout(n, itemsize)
    if lane is None:
        # Element count is not tileable as (8k, 128m) without padding; identity
        # semantics mean returning x directly (zero HBM traffic) is both
        # correct and the fastest possible implementation.
        return x

    rows = n // lane
    tile_rows = _choose_tile_rows(rows, lane, itemsize, sub)
    grid = (rows // tile_rows,)

    x2d = x.reshape(rows, lane)  # free bitcast on a contiguous array

    out = pl.pallas_call(
        _copy_kernel,
        out_shape=jax.ShapeDtypeStruct((rows, lane), x.dtype),
        grid_spec=pltpu.PrefetchScalarGridSpec(
            num_scalar_prefetch=0,
            grid=grid,
            in_specs=[pl.BlockSpec((tile_rows, lane), lambda i: (i, 0))],
            out_specs=pl.BlockSpec((tile_rows, lane), lambda i: (i, 0)),
        ),
        compiler_params=pltpu.CompilerParams(
            dimension_semantics=("parallel",),
        ),
        # Output buffer is the (donated) input buffer: in-place copy, no extra
        # HBM output allocation.
        input_output_aliases={0: 0},
    )(x2d)

    return out.reshape(x.shape)


# Donate x so the in/out alias is a true in-place buffer reuse (no XLA
# defensive copy). Callers must not reuse their input array afterwards.
case3_forward = jax.jit(_case3_forward_impl, donate_argnums=0)


class Case3ModelInterfacePallas:
    """Mirror of the PyTorch Case3ModelInterface: holds two (unused) sub-models."""

    def __init__(self, model1=None, model2=None):
        # model1/model2 are never used in forward(); kept only for interface parity.
        self.model1 = model1
        self.model2 = model2

    def __call__(self, x):
        return case3_forward(x)

    def __str__(self):
        return "GenericCase3"


if __name__ == "__main__":
    key = jax.random.PRNGKey(0)
    # NCHW input, small shapes consistent with a generic conv-style model interface.
    x = jax.random.normal(key, (2, 4, 16, 16), dtype=jnp.float32)

    # x is donated to the kernel; keep an independent copy for verification.
    x_expected = jax.block_until_ready(jnp.array(x, copy=True))

    model = Case3ModelInterfacePallas()
    y = model(x)
    y = jax.block_until_ready(y)

    assert y.shape == x_expected.shape
    assert y.dtype == x_expected.dtype
    assert bool(jnp.all(y == x_expected))
    print("KERNEL_OK")
</pallas_src>

<mosaic_0001>
module attributes {stable_mosaic.version = 11 : i64} {
  func.func @_copy_kernel(%arg0: i32, %arg1: memref<8x256xf32, #tpu.memory_space<vmem>>, %arg2: memref<8x256xf32, #tpu.memory_space<vmem>>) attributes {dimension_semantics = [#tpu.dimension_semantics<parallel>], iteration_bounds = array<i64: 1>, scalar_prefetch = 0 : i64, scratch_operands = 0 : i64, tpu.core_type = #tpu.core_type<tc>, window_params = [{transform_indices = @transform_0, window_bounds = array<i64: 8, 256>}, {transform_indices = @transform_1, window_bounds = array<i64: 8, 256>}]} {
    %c0 = arith.constant 0 : index
    %c0_0 = arith.constant 0 : index
    %0 = vector.load %arg1[%c0, %c0_0] : memref<8x256xf32, #tpu.memory_space<vmem>>, vector<8x256xf32>
    %c0_1 = arith.constant 0 : index
    %c0_2 = arith.constant 0 : index
    %1 = vector.load %arg2[%c0_1, %c0_2] : memref<8x256xf32, #tpu.memory_space<vmem>>, vector<8x256xf32>
    tpu.vector_store %arg2[%c0_1, %c0_2], %0 {strides = array<i32>} : memref<8x256xf32, #tpu.memory_space<vmem>>, vector<8x256xf32>,
    return
  }
  func.func @transform_0(%arg0: i32) -> (i32, i32) {
    %c0_i32 = arith.constant 0 : i32
    %c0_i32_0 = arith.constant 0 : i32
    return %arg0, %c0_i32 : i32, i32
  }
  func.func @transform_1(%arg0: i32) -> (i32, i32) {
    %c0_i32 = arith.constant 0 : i32
    %c0_i32_0 = arith.constant 0 : i32
    return %arg0, %c0_i32 : i32, i32
  }
}

</mosaic_0001>

<bundles_post_ra>
// kernel: _case3_forward_impl.1
= control target key start
LH: loop header
LB: loop body
LE: loop exit
PB: predicated region body
PF: predicated region fallthrough
CT: control target
= control target key end

     0   :  { %s38_s0 = inlined_call_operand.vmem [shape: f32[8,256], index: 0, kind: input, shape index: {}, may-alias: {0,1}]   ;;  %s39_s1 = inlined_call_operand.vmem [shape: f32[8,256], index: 1, kind: output, shape index: {}, may-alias: {0,1}]  }
   0x1   :  { %v8_v0 = vld [vmem:[%s38_s0] sm:$0xff]  ;;  %v9_v1 = vld [vmem:[%s38_s0 + $0x8] sm:$0xff] }
   0x2   :  { %10 = vst [vmem:[%s39_s1] sm:$0xff] %v8_v0  ;;  %11 = vst [vmem:[%s39_s1 + $0x8] sm:$0xff] %v9_v1 }

</bundles_post_ra>
